<compile_context>
chip_gen: v6e
topology: v6e:2x2x1
jax: 0.10.0
libtpu: 0.0.40
codegen_flags: <defaults>
</compile_context>

<pallas_src>
import functools

import jax
import jax.numpy as jnp
from jax.experimental import pallas as pl
from jax.experimental.pallas import tpu as pltpu


# --------------------------------------------------------------------------- #
# Kernel
# --------------------------------------------------------------------------- #
def attention_kernel(hid_ref, ann_ref, w1a_ref, w2_ref, out_ref, scores_ref, *,
                     s_chunk, num_chunks):
    # hid_ref:    (TB, H)    f32, hidden @ W1h^T + b1 (hoisted to the wrapper)
    # ann_ref:    (TB, S, H) annotations in their stored dtype (f32 or bf16)
    # w1a_ref:    (H, H)     annotation half of W1, (in x out), MXU dtype
    # w2_ref:     (1, H)     second-layer weights as a row vector, f32
    # out_ref:    (TB, S)    softmax attention weights, lane-major over S
    # scores_ref: (TB, S)    f32 VMEM scratch for pre-softmax scores
    tb, s, h = ann_ref.shape
    mm_dtype = w1a_ref.dtype
    hid = hid_ref[...]                                    # (TB, H) f32
    w2 = w2_ref[...]                                      # (1, H)  f32

    def score_block(start, size):
        # Cast to the MXU dtype only here (no wrapper-side HBM cast pass).
        ann = ann_ref[:, pl.ds(start, size), :].astype(mm_dtype)   # (TB,size,H)
        part = jnp.dot(ann.reshape(tb * size, h), w1a_ref[...],
                       preferred_element_type=jnp.float32)         # (TB*size,H)
        pre = part.reshape(tb, size, h) + hid[:, None, :]          # f32
        act = jnp.maximum(pre, 0.0)                                # ReLU, f32
        # Second layer has out-features == 1: do it on the VPU as a broadcast
        # multiply + lane reduction instead of an N=1 MXU matmul.  Scores stay
        # lane-major (TB, size); b2 is dropped exactly (softmax shift-invariance).
        return jnp.sum(act * w2[None, :, :], axis=-1)              # (TB, size)

    if num_chunks == 1:
        scores_ref[...] = score_block(0, s)
    else:
        # Chunk S so the live f32 (TB, s_chunk, H) intermediates stay bounded.
        # s_chunk is a multiple of 128, so slices / stores stay lane-aligned.
        def body(c, carry):
            start = pl.multiple_of(c * s_chunk, 128)
            scores_ref[:, pl.ds(start, s_chunk)] = score_block(start, s_chunk)
            return carry
        jax.lax.fori_loop(0, num_chunks, body, 0)

    # Softmax over the sequence axis (lane reductions on the (TB, S) scores).
    scores = scores_ref[...]                               # (TB, S) f32
    m = jnp.max(scores, axis=-1, keepdims=True)
    e = jnp.exp(scores - m)
    denom = jnp.sum(e, axis=-1, keepdims=True)
    # Exact normalization: the approx reciprocal saves nothing measurable here
    # and breaks sum-to-1 at ~2^-12 relative error.
    out_ref[...] = (e / denom).astype(out_ref.dtype)


# --------------------------------------------------------------------------- #
# One-time parameter preprocessing (hoisted out of the forward path)
# --------------------------------------------------------------------------- #
def prepare_params(params, hidden_size, matmul_dtype=jnp.bfloat16):
    """Split PyTorch-layout W1 (H, 2H) into hidden/annotation halves, pre-
    transpose to (in, out), lay W2 out as a row vector.  The annotation half
    (the big in-kernel MXU matmul) defaults to bf16 - the native MXU dtype on
    v5e/v6e/v7x; the hidden half stays f32 since it is applied once per batch
    row by a tiny hoisted XLA matmul.  b2 is intentionally omitted: softmax is
    invariant to a constant shift."""
    h = hidden_size
    w1, b1, w2 = params["w1"], params["b1"], params["w2"]
    return {
        "w1h": jnp.transpose(w1[:, :h]).astype(jnp.float32),    # (H, H) in x out
        "w1a": jnp.transpose(w1[:, h:]).astype(matmul_dtype),   # (H, H) in x out
        "b1": b1.reshape(1, h).astype(jnp.float32),             # (1, H)
        "w2_row": w2.reshape(1, h).astype(jnp.float32),         # (1, H)
    }


# --------------------------------------------------------------------------- #
# Tiling / VMEM budgeting
# --------------------------------------------------------------------------- #
def _vmem_caps():
    """(physical, budget) VMEM bytes; generation-aware (v5e/v6e 128 MiB, v7x
    64 MiB).  Budget keeps ~25% headroom for compiler-internal scratch."""
    try:
        phys = int(pltpu.get_tpu_info().vmem_capacity_bytes)
    except Exception:
        phys = 64 * 1024 * 1024          # conservative: assume v7x-sized VMEM
    return phys, int(phys * 0.75)


def _pick_seq_chunk(s, target=512):
    """Chunk S so f32 (TB, s_chunk, H) intermediates stay bounded.  Chunks are
    multiples of 128 (lane-aligned chunk stores); otherwise fall back to one
    chunk.  (Padding S to a multiple of 128 upstream keeps the output store and
    softmax lane reductions fully lane-dense for awkward S.)"""
    if s <= target:
        return s, 1
    for c in range(target - target % 128, 127, -128):
        if s % c == 0:
            return c, s // c
    return s, 1


def _estimate_vmem_bytes(tb, s, h, s_chunk, ann_bytes, w_bytes):
    ann_blk = 2 * tb * s * h * ann_bytes      # double-buffered annotation block
    hid_blk = 2 * tb * h * 4                  # double-buffered hid_part block
    out_blk = 2 * tb * s * 4                  # double-buffered output block
    scores = tb * s * 4                       # scratch
    # NOTE: w1a/w2 are grid-invariant; pipeline_mode=pl.Buffered(1) would
    # reclaim their second buffer - we instead account for both buffers here to
    # stay on the conservative, widely-supported path.
    weights = 2 * (h * h * w_bytes + h * 4)
    interm = 3 * tb * s_chunk * h * 4         # live f32 ann_part/pre/act chunk
    return ann_blk + hid_blk + out_blk + scores + weights + interm


def _pick_batch_tile(b, s, h, s_chunk, ann_bytes, w_bytes, budget):
    # Valid tiles: divisors of B that are a multiple of 8 (sublane constraint on
    # the (TB, H)/(TB, S) blocks) or the whole batch.
    cands = [tb for tb in range(b, 0, -1)
             if b % tb == 0 and (tb == b or tb % 8 == 0)]
    fitting = [tb for tb in cands
               if _estimate_vmem_bytes(tb, s, h, s_chunk, ann_bytes, w_bytes) <= budget]
    if not fitting:
        return cands[-1]
    # Prefer >= 2 grid steps when possible so megacore (v7x: 2 TensorCores) can
    # shard the parallel batch axis; costs at most one extra step elsewhere.
    multi = [tb for tb in fitting if b // tb >= 2]
    return multi[0] if multi else fitting[0]


# --------------------------------------------------------------------------- #
# Forward wrapper
# --------------------------------------------------------------------------- #
def attention_forward(hidden, annotations, prepped, *, batch_tile=None,
                      seq_chunk_target=512):
    """hidden: (B, H), annotations: (B, S, H) -> (B, S, 1) softmax weights."""
    B, S, H = annotations.shape
    mm_dtype = prepped["w1a"].dtype

    # Hoisted first-layer "hidden" half: one small XLA matmul over the whole
    # batch (exact f32, ~1/S of FLOPs); frees W1h from VMEM and removes the
    # tiny-M MXU op from the kernel.
    hid_part = jnp.dot(hidden.astype(jnp.float32), prepped["w1h"],
                       preferred_element_type=jnp.float32) + prepped["b1"]   # (B,H)

    ann_bytes = jnp.dtype(annotations.dtype).itemsize
    w_bytes = jnp.dtype(mm_dtype).itemsize
    s_chunk, num_chunks = _pick_seq_chunk(S, seq_chunk_target)
    phys, budget = _vmem_caps()
    tb = (batch_tile if batch_tile is not None else
          _pick_batch_tile(B, S, H, s_chunk, ann_bytes, w_bytes, budget))
    grid = (B // tb,)
    est = _estimate_vmem_bytes(tb, S, H, s_chunk, ann_bytes, w_bytes)
    vmem_limit = int(min(phys * 0.9, max(est * 1.25, 32 * 1024 * 1024)))

    kernel = functools.partial(attention_kernel,
                               s_chunk=s_chunk, num_chunks=num_chunks)

    out = pl.pallas_call(
        kernel,
        out_shape=jax.ShapeDtypeStruct((B, S), jnp.float32),
        grid_spec=pltpu.PrefetchScalarGridSpec(
            num_scalar_prefetch=0,
            grid=grid,
            in_specs=[
                pl.BlockSpec((tb, H), lambda b: (b, 0)),         # hid_part (f32)
                pl.BlockSpec((tb, S, H), lambda b: (b, 0, 0)),   # annotations
                pl.BlockSpec((H, H), lambda b: (0, 0)),          # w1a (MXU dtype)
                pl.BlockSpec((1, H), lambda b: (0, 0)),          # w2 row (f32)
            ],
            out_specs=pl.BlockSpec((tb, S), lambda b: (b, 0)),
            scratch_shapes=[pltpu.VMEM((tb, S), jnp.float32)],
        ),
        compiler_params=pltpu.CompilerParams(
            dimension_semantics=("parallel",),
            vmem_limit_bytes=vmem_limit),
    )(hid_part, annotations, prepped["w1a"], prepped["w2_row"])
    return out.reshape(B, S, 1)


# --------------------------------------------------------------------------- #
# Reference / init
# --------------------------------------------------------------------------- #
def init_params(key, hidden_size):
    """Deterministic init matching the PyTorch module's parameter shapes."""
    k1, k2, k3, k4 = jax.random.split(key, 4)
    bound1 = 1.0 / jnp.sqrt(2.0 * hidden_size)
    bound2 = 1.0 / jnp.sqrt(float(hidden_size))
    return {
        "w1": jax.random.uniform(k1, (hidden_size, 2 * hidden_size),
                                 jnp.float32, -bound1, bound1),
        "b1": jax.random.uniform(k2, (hidden_size,), jnp.float32, -bound1, bound1),
        "w2": jax.random.uniform(k3, (1, hidden_size), jnp.float32, -bound2, bound2),
        "b2": jax.random.uniform(k4, (1,), jnp.float32, -bound2, bound2),
    }


def reference_forward(hidden, annotations, params):
    """Pure-JAX reference reproducing the PyTorch forward exactly (incl. b2),
    with HIGHEST-precision matmuls so it serves as ground truth."""
    B, S, H = annotations.shape
    hi = jax.lax.Precision.HIGHEST
    expanded = jnp.broadcast_to(hidden[:, None, :], (B, S, H))
    concat = jnp.concatenate([expanded, annotations], axis=2).reshape(-1, 2 * H)
    h = jnp.maximum(jnp.dot(concat, params["w1"].T, precision=hi) + params["b1"], 0.0)
    scores = (jnp.dot(h, params["w2"].T, precision=hi) + params["b2"]).reshape(B, S, 1)
    return jax.nn.softmax(scores, axis=1)


if __name__ == "__main__":
    B, S, H = 2, 8, 32
    key = jax.random.PRNGKey(0)
    k_h, k_a, k_p = jax.random.split(key, 3)
    hidden = jax.random.normal(k_h, (B, H), jnp.float32)
    annotations = jax.random.normal(k_a, (B, S, H), jnp.float32)
    params = init_params(k_p, H)
    ref = reference_forward(hidden, annotations, params)

    # f32 MXU path (tighter check; tolerance covers default-precision MXU passes).
    prepped_f32 = prepare_params(params, H, matmul_dtype=jnp.float32)
    out_f32 = jax.block_until_ready(attention_forward(hidden, annotations, prepped_f32))
    assert out_f32.shape == (B, S, 1)
    assert jnp.allclose(out_f32, ref, atol=5e-3, rtol=5e-3), "f32 path mismatch vs reference"
    assert jnp.allclose(jnp.sum(out_f32, axis=1), 1.0, atol=1e-4), "f32 softmax not normalized"

    # bf16 MXU path (production default on v5e/v6e/v7x; looser check).
    prepped_bf16 = prepare_params(params, H)   # matmul_dtype defaults to bfloat16
    out_bf16 = jax.block_until_ready(attention_forward(hidden, annotations, prepped_bf16))
    assert out_bf16.shape == (B, S, 1)
    assert jnp.allclose(out_bf16, ref, atol=2e-2, rtol=2e-2), "bf16 path mismatch vs reference"
    assert jnp.allclose(jnp.sum(out_bf16, axis=1), 1.0, atol=1e-4), "bf16 softmax not normalized"

    print("KERNEL_OK")
</pallas_src>

<mosaic_0001>
module attributes {stable_mosaic.version = 11 : i64} {
  func.func @attention_kernel(%arg0: i32, %arg1: memref<2x32xf32, #tpu.memory_space<vmem>>, %arg2: memref<2x8x32xf32, #tpu.memory_space<vmem>>, %arg3: memref<32x32xf32, #tpu.memory_space<vmem>>, %arg4: memref<1x32xf32, #tpu.memory_space<vmem>>, %arg5: memref<2x8xf32, #tpu.memory_space<vmem>>, %arg6: memref<2x8xf32, #tpu.memory_space<vmem>>) attributes {dimension_semantics = [#tpu.dimension_semantics<parallel>], iteration_bounds = array<i64: 1>, scalar_prefetch = 0 : i64, scratch_operands = 1 : i64, tpu.core_type = #tpu.core_type<tc>, window_params = [{transform_indices = @transform_0, window_bounds = array<i64: 2, 32>}, {transform_indices = @transform_1, window_bounds = array<i64: 2, 8, 32>}, {pipeline_mode = #tpu.pipeline_mode<synchronous>, transform_indices = @transform_2, window_bounds = array<i64: 32, 32>}, {pipeline_mode = #tpu.pipeline_mode<synchronous>, transform_indices = @transform_3, window_bounds = array<i64: 1, 32>}, {transform_indices = @transform_4, window_bounds = array<i64: 2, 8>}]} {
    %c0 = arith.constant 0 : index
    %c0_0 = arith.constant 0 : index
    %0 = vector.load %arg1[%c0, %c0_0] : memref<2x32xf32, #tpu.memory_space<vmem>>, vector<2x32xf32>
    %c0_1 = arith.constant 0 : index
    %c0_2 = arith.constant 0 : index
    %1 = vector.load %arg4[%c0_1, %c0_2] : memref<1x32xf32, #tpu.memory_space<vmem>>, vector<1x32xf32>
    %c0_3 = arith.constant 0 : index
    %c0_4 = arith.constant 0 : index
    %c0_5 = arith.constant 0 : index
    %2 = vector.load %arg2[%c0_3, %c0_4, %c0_5] : memref<2x8x32xf32, #tpu.memory_space<vmem>>, vector<2x8x32xf32>
    %3 = vector.shape_cast %2 : vector<2x8x32xf32> to vector<16x32xf32>
    %c0_6 = arith.constant 0 : index
    %c0_7 = arith.constant 0 : index
    %4 = vector.load %arg3[%c0_6, %c0_7] : memref<32x32xf32, #tpu.memory_space<vmem>>, vector<32x32xf32>
    %cst = arith.constant dense<0.000000e+00> : vector<16x32xf32>
    %5 = tpu.matmul %3, %4, %cst {dimension_numbers = #tpu.dot_dimension_numbers<[1], [0], [0], [1], [0, 0, 1, 1], [], []>} : vector<16x32xf32>, vector<32x32xf32>, vector<16x32xf32> -> vector<16x32xf32>
    %6 = vector.shape_cast %5 : vector<16x32xf32> to vector<2x8x32xf32>
    %7 = vector.shape_cast %0 : vector<2x32xf32> to vector<2x1x32xf32>
    %8 = vector.broadcast %7 : vector<2x1x32xf32> to vector<2x8x32xf32>
    %9 = arith.addf %6, %8 : vector<2x8x32xf32>
    %cst_8 = arith.constant 0.000000e+00 : f32
    %10 = vector.broadcast %cst_8 : f32 to vector<2x8x32xf32>
    %11 = arith.maximumf %9, %10 : vector<2x8x32xf32>
    %12 = vector.shape_cast %1 : vector<1x32xf32> to vector<1x1x32xf32>
    %13 = vector.broadcast %12 : vector<1x1x32xf32> to vector<2x8x32xf32>
    %14 = arith.mulf %11, %13 : vector<2x8x32xf32>
    %cst_9 = arith.constant dense<0.000000e+00> : vector<2x8xf32>
    %15 = vector.multi_reduction <add>, %14, %cst_9 [2] : vector<2x8x32xf32> to vector<2x8xf32>
    %c0_10 = arith.constant 0 : index
    %c0_11 = arith.constant 0 : index
    %16 = vector.load %arg6[%c0_10, %c0_11] : memref<2x8xf32, #tpu.memory_space<vmem>>, vector<2x8xf32>
    tpu.vector_store %arg6[%c0_10, %c0_11], %15 {strides = array<i32>} : memref<2x8xf32, #tpu.memory_space<vmem>>, vector<2x8xf32>,
    %c0_12 = arith.constant 0 : index
    %c0_13 = arith.constant 0 : index
    %17 = vector.load %arg6[%c0_12, %c0_13] : memref<2x8xf32, #tpu.memory_space<vmem>>, vector<2x8xf32>
    %cst_14 = arith.constant dense<0xFF800000> : vector<2xf32>
    %18 = vector.multi_reduction <maximumf>, %17, %cst_14 [1] : vector<2x8xf32> to vector<2xf32>
    %19 = vector.shape_cast %18 : vector<2xf32> to vector<2x1xf32>
    %20 = vector.broadcast %19 : vector<2x1xf32> to vector<2x8xf32>
    %21 = arith.subf %17, %20 : vector<2x8xf32>
    %22 = math.exp %21 : vector<2x8xf32>
    %cst_15 = arith.constant dense<0.000000e+00> : vector<2xf32>
    %23 = vector.multi_reduction <add>, %22, %cst_15 [1] : vector<2x8xf32> to vector<2xf32>
    %24 = vector.shape_cast %23 : vector<2xf32> to vector<2x1xf32>
    %25 = vector.broadcast %24 : vector<2x1xf32> to vector<2x8xf32>
    %26 = arith.divf %22, %25 : vector<2x8xf32>
    %c0_16 = arith.constant 0 : index
    %c0_17 = arith.constant 0 : index
    %27 = vector.load %arg5[%c0_16, %c0_17] : memref<2x8xf32, #tpu.memory_space<vmem>>, vector<2x8xf32>
    tpu.vector_store %arg5[%c0_16, %c0_17], %26 {strides = array<i32>} : memref<2x8xf32, #tpu.memory_space<vmem>>, vector<2x8xf32>,
    return
  }
  func.func @transform_0(%arg0: i32) -> (i32, i32) {
    %c0_i32 = arith.constant 0 : i32
    %c0_i32_0 = arith.constant 0 : i32
    return %arg0, %c0_i32 : i32, i32
  }
  func.func @transform_1(%arg0: i32) -> (i32, i32, i32) {
    %c0_i32 = arith.constant 0 : i32
    %c0_i32_0 = arith.constant 0 : i32
    %c0_i32_1 = arith.constant 0 : i32
    return %arg0, %c0_i32, %c0_i32_0 : i32, i32, i32
  }
  func.func @transform_2(%arg0: i32) -> (i32, i32) {
    %c0_i32 = arith.constant 0 : i32
    %c0_i32_0 = arith.constant 0 : i32
    %c0_i32_1 = arith.constant 0 : i32
    return %c0_i32, %c0_i32_0 : i32, i32
  }
  func.func @transform_3(%arg0: i32) -> (i32, i32) {
    %c0_i32 = arith.constant 0 : i32
    %c0_i32_0 = arith.constant 0 : i32
    %c0_i32_1 = arith.constant 0 : i32
    return %c0_i32, %c0_i32_0 : i32, i32
  }
  func.func @transform_4(%arg0: i32) -> (i32, i32) {
    %c0_i32 = arith.constant 0 : i32
    %c0_i32_0 = arith.constant 0 : i32
    return %arg0, %c0_i32 : i32, i32
  }
}

</mosaic_0001>

<bundles_post_ra>
// kernel: tpu_custom_call.1
= control target key start
LH: loop header
LB: loop body
LE: loop exit
PB: predicated region body
PF: predicated region fallthrough
CT: control target
= control target key end

     0   :  { %9 = vsyncpa [#allocation4], 0  ;;  %s417_s0 = inlined_call_operand.hbm [shape: f32[2,32], index: 0, kind: input, shape index: {}]   ;;  %s418_s1 = inlined_call_operand.hbm [shape: f32[2,8,32], index: 1, kind: input, shape index: {}]   ;;  %s419_s2 = inlined_call_operand.hbm [shape: f32[32,32], index: 2, kind: input, shape index: {}]   ;;  %s420_s3 = inlined_call_operand.vmem [shape: f32[1,32], index: 3, kind: input, shape index: {}]   ;;  %s421_s4 = inlined_call_operand.hbm [shape: f32[2,8], index: 4, kind: output, shape index: {}]  }
   0x1   :  { %10 = vsyncpa [#allocation7], 0 }
   0x2   :  { %11 = vsyncpa [#allocation5], 0  ;;  %s362_s15 = smov [#allocation6]  }
   0x3   :  { %s27_s16 = sshll.u32 %s362_s15, 4  ;;  %s28_s16 = int_to_ptr.vmem [resolvable:$true] %s27_s16 }
   0x4   :  { %s284_s17 = scalar_lea.vmem %s28_s16, 256  ;;  %p289_p1 = scmp.lt.s32.totalorder %s28_s16, %s28_s16 }
   0x5   :  { %p285_p0 = scmp.ne.s32.totalorder %s28_s16, %s284_s17  ;;  %p290_p2 = scmp.lt.s32.totalorder %s284_s17, %s284_s17 }
   0x7   :  { %p291_p3 = por %p290_p2, %p289_p1 }
   0x9   :  { %p292_p4 = pnand %p291_p3, %p285_p0 }
   0xb   :  { %295 = shalt.err (!%p292_p4)
}
   0xc   :  { %s363_s18 = smov 128   ;;  %s364_s19 = smov 8  }
   0xd   :  { %33 = dma.hbm_to_vmem [thread:$0]  %s418_s1, 256, %s28_s16, [#allocation7], %s363_s18, %s363_s18, %s364_s19  }
   0xe   :  { %s365_s22 = smov [#allocation3]   ;;  %s366_s24 = smov [#allocation8]  }
   0xf   :  { %s18_s23 = sshll.u32 %s365_s22, 4  ;;  %s39_s25 = sshll.u32 %s366_s24, 4  ;;  %s19_s23 = int_to_ptr.vmem [resolvable:$true] %s18_s23  ;;  %s40_s25 = int_to_ptr.vmem [resolvable:$true] %s39_s25 }
  0x10   :  { %s304_s26 = scalar_lea.vmem %s19_s23, 32  ;;  %p309_p6 = scmp.lt.s32.totalorder %s19_s23, %s19_s23 }
  0x11   :  { %p305_p5 = scmp.ne.s32.totalorder %s19_s23, %s304_s26  ;;  %p310_p7 = scmp.lt.s32.totalorder %s304_s26, %s304_s26 }
  0x13   :  { %p311_p8 = por %p310_p7, %p309_p6 }
  0x15   :  { %p312_p9 = pnand %p311_p8, %p305_p5 }
  0x17   :  { %315 = shalt.err (!%p312_p9)
}
  0x18   :  { %21 = dma.hbm_to_vmem [thread:$0]  %s417_s0, 32, %s19_s23, [#allocation4]  }
  0x19   :  { %s324_s29 = scalar_lea.vmem %s40_s25, 512  ;;  %p329_p11 = scmp.lt.s32.totalorder %s40_s25, %s40_s25 }
  0x1a   :  { %p325_p10 = scmp.ne.s32.totalorder %s40_s25, %s324_s29  ;;  %p330_p12 = scmp.lt.s32.totalorder %s324_s29, %s324_s29 }
  0x1c   :  { %p331_p13 = por %p330_p12, %p329_p11 }
  0x1e   :  { %p332_p0 = pnand %p331_p13, %p325_p10 }
  0x20   :  { %335 = shalt.err (!%p332_p0)
}
  0x21   :  { %45 = dma.hbm_to_vmem [thread:$0]  %s419_s2, 512, %s40_s25, [#allocation7], %s363_s18, %s363_s18, %s364_s19  }
  0x22   :  { %356 = dma.done.wait [#allocation4], 32  }
  0x23   :  { %357 = vsyncadd [#allocation4], 4294967264 }
  0x24   :  { %358 = dma.done.wait [#allocation7], 768  }
  0x25   :  { %359 = vsyncadd [#allocation7], 4294966528  ;;  %vm65_vm0 = vcmask 261120   ;;  %v64_v0 = vld [vmem:[#allocation8 + $0x18] sm:$0xff]  ;;  %v63_v1 = vld [vmem:[#allocation8 + $0x10] sm:$0xff]  ;;  %v159_v6 = vlaneseq  ;;  %vm210_vm1 = vcmask 1041409  }
  0x26   :  { %254 = vmatprep.subr.mxu0 %v64_v0  ;;  %v59_v2 = vld [vmem:[#allocation6] sm:$0xff]  ;;  %v62_v3 = vld [vmem:[#allocation8 + $0x8] sm:$0xff]  ;;  %v61_v4 = vld [vmem:[#allocation8] sm:$0xff]  ;;  %v367_v10 = vmov 1966171168   ;;  %vm213_vm2 = vcmask 58368  }
  0x27   :  { %255 = vmatpush3.msra.mxu0 %v64_v0  ;;  %262 = vmatprep.mubr.msk.f32.mxu0 %vm65_vm0, %v59_v2  ;;  %v60_v5 = vld [vmem:[#allocation6 + $0x8] sm:$0xff]  ;;  %v160_v7 = vshrl.u32 %v159_v6, 7  ;;  %v201_v8 = vand.u32 127, %v159_v6  ;;  %v157_v11 = vunpack.c.l.s4 %v367_v10  ;;  %v247_v27 = vld [vmem:[%s420_s3] ss:$0 sm:$0xff]  ;;  %s368_s3 = smov [#allocation9]  }
  0x28   :  { %256 = vmatprep.subr.mxu0 %v63_v1  ;;  %v246_v13 = vld.sshfl [vmem:[#allocation3] sm:$0x11 pattern:$0x75316420]  ;;  %s234_s5 = sshll.u32 %s368_s3, 4  ;;  %s235_s5 = int_to_ptr.vmem [resolvable:$true] %s234_s5 }
  0x29   :  { %257 = vmatpush3.msra.mxu0 %v63_v1  ;;  %v204_v9 = vsub.s32 %v201_v8, %v160_v7  ;;  %v158_v12 = vunpack.c.0.s8 %v157_v11  ;;  %v155_v14 = vcombine.high %v246_v13, %v246_v13  ;;  %v172_v17 = vsub.s32 0, %v160_v7  ;;  %s336_s6 = scalar_lea.vmem %s235_s5, 32  ;;  %p341_p2 = scmp.lt.s32.totalorder %s235_s5, %s235_s5 }
  0x2a   :  { %258 = vmatprep.subr.mxu0 %v62_v3  ;;  %p337_p1 = scmp.ne.s32.totalorder %s235_s5, %s336_s6  ;;  %p342_p3 = scmp.lt.s32.totalorder %s336_s6, %s336_s6 }
  0x2b   :  { %259 = vmatpush3.msra.mxu0 %v62_v3  ;;  %v161_v15 = vsub.s32 %v158_v12, %v160_v7 }
  0x2c   :  { %260 = vmatprep.subr.mxu0 %v61_v4  ;;  %p343_p4 = por %p342_p3, %p341_p2 }
  0x2d   :  { %261 = vmatpush3.msra.mxu0 %v61_v4  ;;  %v169_v16 = vrot.slane %v155_v14, %v161_v15  ;;  %v162_v18 = vrot.slane %v246_v13, %v161_v15 }
  0x2e   :  { %263 = vmatmul.mubr.msk.f32.vlgmr.msra.gmra.mxu0 %vm65_vm0, %v60_v5  ;;  %p344_p5 = pnand %p343_p4, %p337_p1 }
  0x2f   :  { %v177_v19 = vrot.slane %v169_v16, %v172_v17  ;;  %v173_v20 = vrot.slane %v162_v18, %v172_v17 }
  0xee   :  { %v264_v21 = vpop.f32.mrf.mxu0 }
  0xef   :  { %v181_v22 = vadd.f32 %v264_v21, %v177_v19 }
  0xf0   :  { %v138_v23 = vpop.f32.mrf.mxu0 }
  0xf1   :  { %v180_v24 = vadd.f32 %v173_v20, %v138_v23  ;;  %v183_v25 = vmax.f32 %v181_v22, 0.0 }
  0xf3   :  { %v182_v26 = vmax.f32 %v180_v24, 0.0  ;;  %v191_v30 = vmul.f32 %v247_v27, %v183_v25 }
  0xf5   :  { %v190_v28 = vmul.f32 %v247_v27, %v182_v26  ;;  %v195_v31 = vsel %vm65_vm0, %v191_v30, 0.0 }
  0xf7   :  { %v192_v29 = vsel %vm65_vm0, %v190_v28, 0.0 }
  0xf8   :  { %193 = vadd.xlane.f32.xlu0 %v192_v29 }
  0xfc   :  { %196 = vadd.xlane.f32.xlu0 %v195_v31 }
 0x181   :  { %v194_v32 = vpop.xlane.xlu0 %193 }
 0x182   :  { %v205_v34 = vrot.slane %v194_v32, %v204_v9 }
 0x185   :  { %v197_v33 = vpop.xlane.xlu0 %196 }
 0x186   :  { %v209_v35 = vrot.slane %v197_v33, %v204_v9 }
 0x188   :  { %v211_v36 = vsel %vm210_vm1, %v209_v35, %v205_v34 }
 0x189   :  { %214 = vst.msk [vmem:[#allocation2] sm:$0x3] %vm213_vm2, %v211_v36 }
 0x190   :  { %v215_v37 = vld [vmem:[#allocation2] sm:$0x3] }
 0x191   :  { %v216_v38 = vsel %vm213_vm2, %v215_v37, -inf }
 0x192   :  { %217 = vmax.xlane.f32.xlu1 %v216_v38 }
 0x21b   :  { %v218_v39 = vpop.xlane.xlu1 %217 }
 0x21c   :  { %v219_v40 = vsub.f32 %v215_v37, %v218_v39 }
 0x21e   :  { %v220_v41 = vmul.f32 1.442695, %v219_v40 }
 0x220   :  { %272 = vpow2.f32 %v220_v41 }
 0x22d   :  { %v273_v42 = vpop.eup %272 }
 0x22e   :  { %v222_v43 = vsel %vm213_vm2, %v273_v42, 0.0 }
 0x22f   :  { %223 = vadd.xlane.f32.xlu1 %v222_v43 }
 0x2b8   :  { %v224_v44 = vpop.xlane.xlu1 %223 }
 0x2b9   :  { %274 = vrcp.f32 %v224_v44 }
 0x2c6   :  { %v275_v45 = vpop.eup %274 }
 0x2c7   :  { %v226_v46 = vmul.f32 %v275_v45, %v273_v42 }
 0x2c9   :  { %227 = vst.msk [vmem:[#allocation9] sm:$0x3] %vm213_vm2, %v226_v46 }
 0x2ca   :  { %347 = shalt.err (!%p344_p5)
}
 0x2cb   :  { %237 = dma.vmem_to_hbm [thread:$0]  %s235_s5, 32, %s421_s4, [#allocation5]  }
 0x2cc   :  { %360 = dma.done.wait [#allocation5], 32  }
 0x2cd   :  { %361 = vsyncadd [#allocation5], 4294967264 }
 0x2ce   :  { %241 = vsyncpa [#allocation4], 1 }
 0x2cf   :  { %242 = vsyncpa [#allocation7], 1 }
 0x2d0   :  { %243 = vsyncpa [#allocation5], 1 }

</bundles_post_ra>
